<compile_context>
chip_gen: v7x
topology: tpu7x:2x2x1
jax: 0.10.0
libtpu: 0.0.40
codegen_flags: <defaults>
</compile_context>

<pallas_src>
import functools

import jax
import jax.numpy as jnp
from jax import lax
from jax.experimental import pallas as pl
from jax.experimental.pallas import tpu as pltpu

LN_EPS = 1e-5
LANE = 128
SUBLANE = 8


def _round_up(x, m):
    return (x + m - 1) // m * m


def _vmem_budget_bytes():
    """Per-generation VMEM budget (3/4 of physical capacity, with headroom)."""
    cap = 64 * 1024 * 1024                 # conservative default (v7x has 64 MiB)
    try:
        cap = int(pltpu.get_tpu_info().vmem_capacity_bytes)
    except Exception:
        pass
    return max(16 * 1024 * 1024, (cap * 3) // 4)


def _plan_node_tiling(N, K, Dp, budget_bytes, x_bytes, *, h_bytes=2, e_bytes=4,
                      max_tile=4096):
    """Pick a node tile tn and padded node count Np from the VMEM budget."""
    k_lane = _round_up(K, LANE)            # K lane-padded inside kernel-2 H tile
    k_sub = _round_up(K, SUBLANE)          # K sublane-padded inside kernel-1 H^T tile
    # Double-buffered streaming bytes per node row.
    row1 = 2 * (k_sub * h_bytes + Dp * x_bytes)                 # kernel 1: H^T col + X row
    row2 = 2 * (k_lane * h_bytes + 2 * Dp * x_bytes)            # kernel 2: H + X + out rows
    # Grid-invariant residents (weights counted twice: conservative even if
    # Buffered(1) is unavailable) + E buffers + accumulator + bias vectors.
    fixed1 = 2 * Dp * Dp * 4 + 2 * K * Dp * e_bytes + K * Dp * 4 + 8 * Dp * 4
    fixed2 = 2 * Dp * Dp * 4 + 2 * K * Dp * e_bytes + 8 * Dp * 4
    avail = budget_bytes - max(fixed1, fixed2)
    max_rows = max(LANE, avail // max(row1, row2)) if avail > 0 else LANE
    cap = min(max_tile, int(max_rows))
    if N <= cap:
        tn = _round_up(N, SUBLANE)         # single tile spanning all (padded) nodes
        return tn, tn
    tn = max(LANE, (cap // LANE) * LANE)   # lane-dense tile for the H^T block
    return tn, _round_up(N, tn)


def _edge_kernel(ht_ref, x_ref, wet_ref, be_ref, lg_ref, lb_ref,
                 e_ref, acc_ref, *, true_d):
    """Accumulate E = H^T X over node tiles, then Linear + ReLU + LayerNorm."""
    @pl.when(pl.program_id(1) == 0)
    def _init():
        acc_ref[...] = jnp.zeros_like(acc_ref)

    # (K, tn) @ (tn, Dp) -> (K, Dp).  Node axis is the MXU contraction and is
    # lane-dense in the H^T tile; H is stored bf16 (exact for 0/1 incidences)
    # and up-cast in-register so numerics match the f32 reference.
    acc_ref[...] += jnp.dot(
        ht_ref[...].astype(jnp.float32), x_ref[...].astype(jnp.float32),
        preferred_element_type=jnp.float32)

    @pl.when(pl.program_id(1) == pl.num_programs(1) - 1)
    def _finalize():
        # Edge Linear (weight pre-transposed at init) + bias + ReLU.
        e = jnp.dot(acc_ref[...], wet_ref[...], preferred_element_type=jnp.float32)
        e = jnp.maximum(e + be_ref[...], 0.0)
        # Two-pass LayerNorm over the true (unpadded) feature width.  Padded
        # lanes of `e` are exactly zero; the centered term is masked so they
        # stay zero and do not pollute the variance.
        col = lax.broadcasted_iota(jnp.int32, e.shape, dimension=1)
        valid = col < true_d
        inv_d = jnp.float32(1.0 / true_d)
        mu = jnp.sum(e, axis=-1, keepdims=True) * inv_d
        centered = jnp.where(valid, e - mu, 0.0)
        var = jnp.sum(centered * centered, axis=-1, keepdims=True) * inv_d
        e = centered * lax.rsqrt(var + LN_EPS)          # rsqrt -> EUP slot
        e = e * lg_ref[...] + lb_ref[...]
        e_ref[...] = e.astype(e_ref.dtype)


def _node_kernel(h_ref, e_ref, x_ref, wnt_ref, bn_ref, o_ref):
    """Per node tile: X_new = H @ E, node Linear, residual + ReLU."""
    xn = jnp.dot(h_ref[...].astype(jnp.float32), e_ref[...].astype(jnp.float32),
                 preferred_element_type=jnp.float32)
    xn = jnp.dot(xn, wnt_ref[...], preferred_element_type=jnp.float32)
    xn = xn + bn_ref[...] + x_ref[...].astype(jnp.float32)
    o_ref[...] = jnp.maximum(xn, 0.0).astype(o_ref.dtype)


def prepare_hypergcn_params(params):
    """Pad / pre-transpose parameters ONCE (call at init, not per forward)."""
    we, be, lg, lb, wn, bn = [jnp.asarray(p, jnp.float32) for p in params]
    D = we.shape[0]
    Dp = _round_up(D, LANE)
    pad = Dp - D

    def pad_mat(w):   # nn.Linear weight (out,in) -> transposed + zero-padded (in,out)
        return jnp.pad(w.T, ((0, pad), (0, pad)))

    def pad_vec(v):
        return jnp.pad(v, (0, pad)).reshape(1, Dp)

    return {"D": D, "Dp": Dp,
            "we_t": pad_mat(we), "be": pad_vec(be),
            "ln_g": pad_vec(lg), "ln_b": pad_vec(lb),
            "wn_t": pad_mat(wn), "bn": pad_vec(bn)}


def _forward_padded(Xp, Hb, Hb_t, pp, *, tn, vmem_limit, single_buffer_weights):
    """Core forward on padded activations (stays padded end-to-end)."""
    B, Np, Dp = Xp.shape
    K = Hb.shape[-1]
    n_tiles = Np // tn

    def const_spec(shape):
        idx = lambda b, n: (0,) * len(shape)
        if single_buffer_weights:
            # Grid-invariant operand: single-buffer it, double-buffering only
            # wastes VMEM (the index map never changes).
            return pl.BlockSpec(shape, idx, pipeline_mode=pl.Buffered(1))
        return pl.BlockSpec(shape, idx)

    # --- Kernel 1: edge aggregation (reduction over node tiles) + edge MLP ---
    e_proc = pl.pallas_call(
        functools.partial(_edge_kernel, true_d=pp["D"]),
        out_shape=jax.ShapeDtypeStruct((B, K, Dp), jnp.float32),
        grid_spec=pltpu.PrefetchScalarGridSpec(
            num_scalar_prefetch=0,
            grid=(B, n_tiles),
            in_specs=[
                pl.BlockSpec((None, K, tn), lambda b, n: (b, 0, n)),   # H^T (bf16)
                pl.BlockSpec((None, tn, Dp), lambda b, n: (b, n, 0)),  # X
                const_spec((Dp, Dp)),                                  # We^T
                const_spec((1, Dp)),                                   # b_edge
                const_spec((1, Dp)),                                   # ln gamma
                const_spec((1, Dp)),                                   # ln beta
            ],
            out_specs=pl.BlockSpec((None, K, Dp), lambda b, n: (b, 0, 0)),
            scratch_shapes=[pltpu.VMEM((K, Dp), jnp.float32)],
        ),
        compiler_params=pltpu.CompilerParams(
            dimension_semantics=("parallel", "arbitrary"),
            vmem_limit_bytes=vmem_limit),
    )(Hb_t, Xp, pp["we_t"], pp["be"], pp["ln_g"], pp["ln_b"])

    # --- Kernel 2: node aggregation + node MLP + residual + ReLU ------------
    out_p = pl.pallas_call(
        _node_kernel,
        out_shape=jax.ShapeDtypeStruct((B, Np, Dp), Xp.dtype),
        grid_spec=pltpu.PrefetchScalarGridSpec(
            num_scalar_prefetch=0,
            grid=(B, n_tiles),
            in_specs=[
                pl.BlockSpec((None, tn, K), lambda b, n: (b, n, 0)),   # H (bf16)
                pl.BlockSpec((None, K, Dp), lambda b, n: (b, 0, 0)),   # E
                pl.BlockSpec((None, tn, Dp), lambda b, n: (b, n, 0)),  # X (residual)
                const_spec((Dp, Dp)),                                  # Wn^T
                const_spec((1, Dp)),                                   # b_node
            ],
            out_specs=pl.BlockSpec((None, tn, Dp), lambda b, n: (b, n, 0)),
        ),
        compiler_params=pltpu.CompilerParams(
            dimension_semantics=("parallel", "parallel"),
            vmem_limit_bytes=vmem_limit),
    )(Hb, e_proc, Xp, pp["wn_t"], pp["bn"])
    return out_p


def hypergcn_forward(X, H, prepped, *, vmem_budget_bytes=None):
    """X: (B, N, D), H: (B, N, K), prepped from prepare_hypergcn_params."""
    B, N, D = X.shape
    K = H.shape[-1]
    assert D == prepped["D"], "feature_size mismatch with prepared params"
    Dp = prepped["Dp"]

    budget = int(vmem_budget_bytes or _vmem_budget_bytes())
    x_bytes = jnp.dtype(X.dtype).itemsize
    tn, Np = _plan_node_tiling(N, K, Dp, budget, x_bytes)
    pad_d, pad_n = Dp - D, Np - N

    # Pad once here (lane-dense features, tile-aligned nodes).  In a multi-layer
    # stack, keep activations padded end-to-end (call _forward_padded directly)
    # and slice only at the very end; the bf16 H cast/transpose is layer-invariant
    # and can be hoisted too.
    Xp = jnp.pad(X, ((0, 0), (0, pad_n), (0, pad_d))) if (pad_d or pad_n) else X
    Hb = H.astype(jnp.bfloat16)                      # 0/1 incidences: exact in bf16
    if pad_n:
        Hb = jnp.pad(Hb, ((0, 0), (0, pad_n), (0, 0)))
    Hb_t = jnp.swapaxes(Hb, 1, 2)                    # (B, K, Np): lane-dense nodes

    try:
        out_p = _forward_padded(Xp, Hb, Hb_t, prepped, tn=tn, vmem_limit=budget,
                                single_buffer_weights=True)
    except Exception:
        # pl.Buffered(1) unsupported on this jax build: fall back to default
        # double buffering (costs one extra Dp^2 weight buffer per kernel).
        out_p = _forward_padded(Xp, Hb, Hb_t, prepped, tn=tn, vmem_limit=budget,
                                single_buffer_weights=False)

    return out_p[:, :N, :D] if (pad_d or pad_n) else out_p


def hypergcn_reference(X, H, params):
    we, be, lg, lb, wn, bn = params
    Xf = X.astype(jnp.float32)
    Hf = H.astype(jnp.float32)
    E = jnp.einsum('bnk,bnd->bkd', Hf, Xf)
    E = E @ we.T + be
    E = jnp.maximum(E, 0.0)
    mu = jnp.mean(E, axis=-1, keepdims=True)
    var = jnp.mean((E - mu) ** 2, axis=-1, keepdims=True)
    E = (E - mu) / jnp.sqrt(var + LN_EPS) * lg + lb
    Xn = jnp.einsum('bnk,bkd->bnd', Hf, E)
    Xn = Xn @ wn.T + bn
    return jnp.maximum(Xn + Xf, 0.0)


if __name__ == "__main__":
    B, N, K, D = 2, 16, 8, 32  # batch, nodes, hyperedges, feature_size

    key = jax.random.PRNGKey(0)
    kx, kh, k1, k2, k3, k4 = jax.random.split(key, 6)

    X = jax.random.normal(kx, (B, N, D), dtype=jnp.float32)
    H = (jax.random.uniform(kh, (B, N, K)) > 0.5).astype(jnp.float32)

    bound = 1.0 / (D ** 0.5)
    W_edge = jax.random.uniform(k1, (D, D), minval=-bound, maxval=bound)
    b_edge = jax.random.uniform(k2, (D,), minval=-bound, maxval=bound)
    ln_gamma = jnp.ones((D,), jnp.float32)
    ln_beta = jnp.zeros((D,), jnp.float32)
    W_node = jax.random.uniform(k3, (D, D), minval=-bound, maxval=bound)
    b_node = jax.random.uniform(k4, (D,), minval=-bound, maxval=bound)

    params = (W_edge, b_edge, ln_gamma, ln_beta, W_node, b_node)
    prepped = prepare_hypergcn_params(params)   # pad/transpose once, at "init"

    out = hypergcn_forward(X, H, prepped)
    out = jax.block_until_ready(out)

    ref = hypergcn_reference(X, H, params)
    assert out.shape == (B, N, D)
    assert jnp.allclose(out, ref, atol=1e-4, rtol=1e-4), "mismatch vs reference"

    print("KERNEL_OK")
</pallas_src>

<mosaic_0001>
module attributes {stable_mosaic.version = 11 : i64} {
  func.func @_edge_kernel(%arg0: i32, %arg1: i32, %arg2: memref<1x8x16xbf16, #tpu.memory_space<vmem>>, %arg3: memref<1x16x128xf32, #tpu.memory_space<vmem>>, %arg4: memref<128x128xf32, #tpu.memory_space<vmem>>, %arg5: memref<1x128xf32, #tpu.memory_space<vmem>>, %arg6: memref<1x128xf32, #tpu.memory_space<vmem>>, %arg7: memref<1x128xf32, #tpu.memory_space<vmem>>, %arg8: memref<1x8x128xf32, #tpu.memory_space<vmem>>, %arg9: memref<8x128xf32, #tpu.memory_space<vmem>>) attributes {dimension_semantics = [#tpu.dimension_semantics<parallel>, #tpu.dimension_semantics<arbitrary>], iteration_bounds = array<i64: 2, 1>, scalar_prefetch = 0 : i64, scratch_operands = 1 : i64, tpu.core_type = #tpu.core_type<tc>, window_params = [{transform_indices = @transform_0, window_bounds = array<i64: 1, 8, 16>}, {transform_indices = @transform_1, window_bounds = array<i64: 1, 16, 128>}, {pipeline_mode = #tpu.pipeline_mode<synchronous>, transform_indices = @transform_2, window_bounds = array<i64: 128, 128>}, {pipeline_mode = #tpu.pipeline_mode<synchronous>, transform_indices = @transform_3, window_bounds = array<i64: 1, 128>}, {pipeline_mode = #tpu.pipeline_mode<synchronous>, transform_indices = @transform_4, window_bounds = array<i64: 1, 128>}, {pipeline_mode = #tpu.pipeline_mode<synchronous>, transform_indices = @transform_5, window_bounds = array<i64: 1, 128>}, {transform_indices = @transform_6, window_bounds = array<i64: 1, 8, 128>}]} {
    %c0_i32 = arith.constant 0 : i32
    %0 = arith.cmpi eq, %arg1, %c0_i32 : i32
    %1 = arith.extui %0 : i1 to i32
    %c0_i32_0 = arith.constant 0 : i32
    %2 = arith.cmpi ne, %1, %c0_i32_0 : i32
    scf.if %2 {
      %cst_12 = arith.constant 0.000000e+00 : f32
      %15 = vector.broadcast %cst_12 : f32 to vector<8x128xf32>
      %c0_13 = arith.constant 0 : index
      %c0_14 = arith.constant 0 : index
      %16 = vector.load %arg9[%c0_13, %c0_14] : memref<8x128xf32, #tpu.memory_space<vmem>>, vector<8x128xf32>
      tpu.vector_store %arg9[%c0_13, %c0_14], %15 {strides = array<i32>} : memref<8x128xf32, #tpu.memory_space<vmem>>, vector<8x128xf32>,
    } else {
    }
    %c0 = arith.constant 0 : index
    %c0_1 = arith.constant 0 : index
    %3 = vector.load %arg9[%c0, %c0_1] : memref<8x128xf32, #tpu.memory_space<vmem>>, vector<8x128xf32>
    %c0_2 = arith.constant 0 : index
    %c0_3 = arith.constant 0 : index
    %c0_4 = arith.constant 0 : index
    %4 = vector.load %arg2[%c0_2, %c0_3, %c0_4] : memref<1x8x16xbf16, #tpu.memory_space<vmem>>, vector<1x8x16xbf16>
    %5 = vector.shape_cast %4 : vector<1x8x16xbf16> to vector<8x16xbf16>
    %6 = arith.extf %5 : vector<8x16xbf16> to vector<8x16xf32>
    %c0_5 = arith.constant 0 : index
    %c0_6 = arith.constant 0 : index
    %c0_7 = arith.constant 0 : index
    %7 = vector.load %arg3[%c0_5, %c0_6, %c0_7] : memref<1x16x128xf32, #tpu.memory_space<vmem>>, vector<1x16x128xf32>
    %8 = vector.shape_cast %7 : vector<1x16x128xf32> to vector<16x128xf32>
    %cst = arith.constant dense<0.000000e+00> : vector<8x128xf32>
    %9 = tpu.matmul %6, %8, %cst {dimension_numbers = #tpu.dot_dimension_numbers<[1], [0], [0], [1], [0, 0, 1, 1], [], []>} : vector<8x16xf32>, vector<16x128xf32>, vector<8x128xf32> -> vector<8x128xf32>
    %10 = arith.addf %3, %9 : vector<8x128xf32>
    %c0_8 = arith.constant 0 : index
    %c0_9 = arith.constant 0 : index
    %11 = vector.load %arg9[%c0_8, %c0_9] : memref<8x128xf32, #tpu.memory_space<vmem>>, vector<8x128xf32>
    tpu.vector_store %arg9[%c0_8, %c0_9], %10 {strides = array<i32>} : memref<8x128xf32, #tpu.memory_space<vmem>>, vector<8x128xf32>,
    %c0_i32_10 = arith.constant 0 : i32
    %12 = arith.cmpi eq, %arg1, %c0_i32_10 : i32
    %13 = arith.extui %12 : i1 to i32
    %c0_i32_11 = arith.constant 0 : i32
    %14 = arith.cmpi ne, %13, %c0_i32_11 : i32
    scf.if %14 {
      %c0_12 = arith.constant 0 : index
      %c0_13 = arith.constant 0 : index
      %15 = vector.load %arg9[%c0_12, %c0_13] : memref<8x128xf32, #tpu.memory_space<vmem>>, vector<8x128xf32>
      %c0_14 = arith.constant 0 : index
      %c0_15 = arith.constant 0 : index
      %16 = vector.load %arg4[%c0_14, %c0_15] : memref<128x128xf32, #tpu.memory_space<vmem>>, vector<128x128xf32>
      %cst_16 = arith.constant dense<0.000000e+00> : vector<8x128xf32>
      %17 = tpu.matmul %15, %16, %cst_16 {dimension_numbers = #tpu.dot_dimension_numbers<[1], [0], [0], [1], [0, 0, 1, 1], [], []>} : vector<8x128xf32>, vector<128x128xf32>, vector<8x128xf32> -> vector<8x128xf32>
      %c0_17 = arith.constant 0 : index
      %c0_18 = arith.constant 0 : index
      %18 = vector.load %arg5[%c0_17, %c0_18] : memref<1x128xf32, #tpu.memory_space<vmem>>, vector<1x128xf32>
      %19 = vector.broadcast %18 : vector<1x128xf32> to vector<8x128xf32>
      %20 = arith.addf %17, %19 : vector<8x128xf32>
      %cst_19 = arith.constant 0.000000e+00 : f32
      %21 = vector.broadcast %cst_19 : f32 to vector<8x128xf32>
      %22 = arith.maximumf %20, %21 : vector<8x128xf32>
      %23 = tpu.iota {dimensions = array<i32: 1>} : vector<8x128xi32>
      %c32_i32 = arith.constant 32 : i32
      %24 = vector.broadcast %c32_i32 : i32 to vector<8x128xi32>
      %25 = arith.cmpi slt, %23, %24 : vector<8x128xi32>
      %cst_20 = arith.constant dense<0.000000e+00> : vector<8xf32>
      %26 = vector.multi_reduction <add>, %22, %cst_20 [1] : vector<8x128xf32> to vector<8xf32>
      %27 = vector.shape_cast %26 : vector<8xf32> to vector<8x1xf32>
      %cst_21 = arith.constant 3.125000e-02 : f32
      %28 = vector.broadcast %cst_21 : f32 to vector<8x1xf32>
      %29 = arith.mulf %27, %28 : vector<8x1xf32>
      %30 = vector.broadcast %29 : vector<8x1xf32> to vector<8x128xf32>
      %31 = arith.subf %22, %30 : vector<8x128xf32>
      %cst_22 = arith.constant 0.000000e+00 : f32
      %32 = vector.broadcast %cst_22 : f32 to vector<8x128xf32>
      %33 = arith.select %25, %31, %32 : vector<8x128xi1>, vector<8x128xf32>
      %34 = arith.mulf %33, %33 : vector<8x128xf32>
      %cst_23 = arith.constant dense<0.000000e+00> : vector<8xf32>
      %35 = vector.multi_reduction <add>, %34, %cst_23 [1] : vector<8x128xf32> to vector<8xf32>
      %36 = vector.shape_cast %35 : vector<8xf32> to vector<8x1xf32>
      %cst_24 = arith.constant 3.125000e-02 : f32
      %37 = vector.broadcast %cst_24 : f32 to vector<8x1xf32>
      %38 = arith.mulf %36, %37 : vector<8x1xf32>
      %cst_25 = arith.constant 9.99999974E-6 : f32
      %39 = vector.broadcast %cst_25 : f32 to vector<8x1xf32>
      %40 = arith.addf %38, %39 : vector<8x1xf32>
      %41 = math.rsqrt %40 : vector<8x1xf32>
      %42 = vector.broadcast %41 : vector<8x1xf32> to vector<8x128xf32>
      %43 = arith.mulf %33, %42 : vector<8x128xf32>
      %c0_26 = arith.constant 0 : index
      %c0_27 = arith.constant 0 : index
      %44 = vector.load %arg6[%c0_26, %c0_27] : memref<1x128xf32, #tpu.memory_space<vmem>>, vector<1x128xf32>
      %45 = vector.broadcast %44 : vector<1x128xf32> to vector<8x128xf32>
      %46 = arith.mulf %43, %45 : vector<8x128xf32>
      %c0_28 = arith.constant 0 : index
      %c0_29 = arith.constant 0 : index
      %47 = vector.load %arg7[%c0_28, %c0_29] : memref<1x128xf32, #tpu.memory_space<vmem>>, vector<1x128xf32>
      %48 = vector.broadcast %47 : vector<1x128xf32> to vector<8x128xf32>
      %49 = arith.addf %46, %48 : vector<8x128xf32>
      %c0_30 = arith.constant 0 : index
      %c0_31 = arith.constant 0 : index
      %c0_32 = arith.constant 0 : index
      %50 = vector.load %arg8[%c0_30, %c0_31, %c0_32] : memref<1x8x128xf32, #tpu.memory_space<vmem>>, vector<1x8x128xf32>
      %51 = vector.shape_cast %50 : vector<1x8x128xf32> to vector<8x128xf32>
      %52 = vector.shape_cast %49 : vector<8x128xf32> to vector<1x8x128xf32>
      tpu.vector_store %arg8[%c0_30, %c0_31, %c0_32], %52 {strides = array<i32>} : memref<1x8x128xf32, #tpu.memory_space<vmem>>, vector<1x8x128xf32>,
    } else {
    }
    return
  }
  func.func @transform_0(%arg0: i32, %arg1: i32) -> (i32, i32, i32) {
    %c0_i32 = arith.constant 0 : i32
    %c0_i32_0 = arith.constant 0 : i32
    return %arg0, %c0_i32, %arg1 : i32, i32, i32
  }
  func.func @transform_1(%arg0: i32, %arg1: i32) -> (i32, i32, i32) {
    %c0_i32 = arith.constant 0 : i32
    %c0_i32_0 = arith.constant 0 : i32
    return %arg0, %arg1, %c0_i32 : i32, i32, i32
  }
  func.func @transform_2(%arg0: i32, %arg1: i32) -> (i32, i32) {
    %c0_i32 = arith.constant 0 : i32
    %c0_i32_0 = arith.constant 0 : i32
    %c0_i32_1 = arith.constant 0 : i32
    return %c0_i32, %c0_i32_0 : i32, i32
  }
  func.func @transform_3(%arg0: i32, %arg1: i32) -> (i32, i32) {
    %c0_i32 = arith.constant 0 : i32
    %c0_i32_0 = arith.constant 0 : i32
    %c0_i32_1 = arith.constant 0 : i32
    return %c0_i32, %c0_i32_0 : i32, i32
  }
  func.func @transform_4(%arg0: i32, %arg1: i32) -> (i32, i32) {
    %c0_i32 = arith.constant 0 : i32
    %c0_i32_0 = arith.constant 0 : i32
    %c0_i32_1 = arith.constant 0 : i32
    return %c0_i32, %c0_i32_0 : i32, i32
  }
  func.func @transform_5(%arg0: i32, %arg1: i32) -> (i32, i32) {
    %c0_i32 = arith.constant 0 : i32
    %c0_i32_0 = arith.constant 0 : i32
    %c0_i32_1 = arith.constant 0 : i32
    return %c0_i32, %c0_i32_0 : i32, i32
  }
  func.func @transform_6(%arg0: i32, %arg1: i32) -> (i32, i32, i32) {
    %c0_i32 = arith.constant 0 : i32
    %c0_i32_0 = arith.constant 0 : i32
    %c0_i32_1 = arith.constant 0 : i32
    return %arg0, %c0_i32, %c0_i32_0 : i32, i32, i32
  }
}

module attributes {stable_mosaic.version = 11 : i64} {
  func.func @_edge_kernel(%arg0: i32, %arg1: i32, %arg2: memref<1x8x16xbf16, #tpu.memory_space<vmem>>, %arg3: memref<1x16x128xf32, #tpu.memory_space<vmem>>, %arg4: memref<128x128xf32, #tpu.memory_space<vmem>>, %arg5: memref<1x128xf32, #tpu.memory_space<vmem>>, %arg6: memref<1x128xf32, #tpu.memory_space<vmem>>, %arg7: memref<1x128xf32, #tpu.memory_space<vmem>>, %arg8: memref<1x8x128xf32, #tpu.memory_space<vmem>>, %arg9: memref<8x128xf32, #tpu.memory_space<vmem>>) attributes {dimension_semantics = [#tpu.dimension_semantics<parallel>, #tpu.dimension_semantics<arbitrary>], iteration_bounds = array<i64: 2, 1>, scalar_prefetch = 0 : i64, scratch_operands = 1 : i64, tpu.core_type = #tpu.core_type<tc>, window_params = [{transform_indices = @transform_0, window_bounds = array<i64: 1, 8, 16>}, {transform_indices = @transform_1, window_bounds = array<i64: 1, 16, 128>}, {pipeline_mode = #tpu.pipeline_mode<synchronous>, transform_indices = @transform_2, window_bounds = array<i64: 128, 128>}, {pipeline_mode = #tpu.pipeline_mode<synchronous>, transform_indices = @transform_3, window_bounds = array<i64: 1, 128>}, {pipeline_mode = #tpu.pipeline_mode<synchronous>, transform_indices = @transform_4, window_bounds = array<i64: 1, 128>}, {pipeline_mode = #tpu.pipeline_mode<synchronous>, transform_indices = @transform_5, window_bounds = array<i64: 1, 128>}, {transform_indices = @transform_6, window_bounds = array<i64: 1, 8, 128>}]} {
    %c0_i32 = arith.constant 0 : i32
    %0 = arith.cmpi eq, %arg1, %c0_i32 : i32
    %1 = arith.extui %0 : i1 to i32
    %c0_i32_0 = arith.constant 0 : i32
    %2 = arith.cmpi ne, %1, %c0_i32_0 : i32
    scf.if %2 {
      %cst_12 = arith.constant 0.000000e+00 : f32
      %15 = vector.broadcast %cst_12 : f32 to vector<8x128xf32>
      %c0_13 = arith.constant 0 : index
      %c0_14 = arith.constant 0 : index
      %16 = vector.load %arg9[%c0_13, %c0_14] : memref<8x128xf32, #tpu.memory_space<vmem>>, vector<8x128xf32>
      tpu.vector_store %arg9[%c0_13, %c0_14], %15 {strides = array<i32>} : memref<8x128xf32, #tpu.memory_space<vmem>>, vector<8x128xf32>,
    } else {
    }
    %c0 = arith.constant 0 : index
    %c0_1 = arith.constant 0 : index
    %3 = vector.load %arg9[%c0, %c0_1] : memref<8x128xf32, #tpu.memory_space<vmem>>, vector<8x128xf32>
    %c0_2 = arith.constant 0 : index
    %c0_3 = arith.constant 0 : index
    %c0_4 = arith.constant 0 : index
    %4 = vector.load %arg2[%c0_2, %c0_3, %c0_4] : memref<1x8x16xbf16, #tpu.memory_space<vmem>>, vector<1x8x16xbf16>
    %5 = vector.shape_cast %4 : vector<1x8x16xbf16> to vector<8x16xbf16>
    %6 = arith.extf %5 : vector<8x16xbf16> to vector<8x16xf32>
    %c0_5 = arith.constant 0 : index
    %c0_6 = arith.constant 0 : index
    %c0_7 = arith.constant 0 : index
    %7 = vector.load %arg3[%c0_5, %c0_6, %c0_7] : memref<1x16x128xf32, #tpu.memory_space<vmem>>, vector<1x16x128xf32>
    %8 = vector.shape_cast %7 : vector<1x16x128xf32> to vector<16x128xf32>
    %cst = arith.constant dense<0.000000e+00> : vector<8x128xf32>
    %9 = tpu.matmul %6, %8, %cst {dimension_numbers = #tpu.dot_dimension_numbers<[1], [0], [0], [1], [0, 0, 1, 1], [], []>} : vector<8x16xf32>, vector<16x128xf32>, vector<8x128xf32> -> vector<8x128xf32>
    %10 = arith.addf %3, %9 : vector<8x128xf32>
    %c0_8 = arith.constant 0 : index
    %c0_9 = arith.constant 0 : index
    %11 = vector.load %arg9[%c0_8, %c0_9] : memref<8x128xf32, #tpu.memory_space<vmem>>, vector<8x128xf32>
    tpu.vector_store %arg9[%c0_8, %c0_9], %10 {strides = array<i32>} : memref<8x128xf32, #tpu.memory_space<vmem>>, vector<8x128xf32>,
    %c0_i32_10 = arith.constant 0 : i32
    %12 = arith.cmpi eq, %arg1, %c0_i32_10 : i32
    %13 = arith.extui %12 : i1 to i32
    %c0_i32_11 = arith.constant 0 : i32
    %14 = arith.cmpi ne, %13, %c0_i32_11 : i32
    scf.if %14 {
      %c0_12 = arith.constant 0 : index
      %c0_13 = arith.constant 0 : index
      %15 = vector.load %arg9[%c0_12, %c0_13] : memref<8x128xf32, #tpu.memory_space<vmem>>, vector<8x128xf32>
      %c0_14 = arith.constant 0 : index
      %c0_15 = arith.constant 0 : index
      %16 = vector.load %arg4[%c0_14, %c0_15] : memref<128x128xf32, #tpu.memory_space<vmem>>, vector<128x128xf32>
      %cst_16 = arith.constant dense<0.000000e+00> : vector<8x128xf32>
      %17 = tpu.matmul %15, %16, %cst_16 {dimension_numbers = #tpu.dot_dimension_numbers<[1], [0], [0], [1], [0, 0, 1, 1], [], []>} : vector<8x128xf32>, vector<128x128xf32>, vector<8x128xf32> -> vector<8x128xf32>
      %c0_17 = arith.constant 0 : index
      %c0_18 = arith.constant 0 : index
      %18 = vector.load %arg5[%c0_17, %c0_18] : memref<1x128xf32, #tpu.memory_space<vmem>>, vector<1x128xf32>
      %19 = vector.broadcast %18 : vector<1x128xf32> to vector<8x128xf32>
      %20 = arith.addf %17, %19 : vector<8x128xf32>
      %cst_19 = arith.constant 0.000000e+00 : f32
      %21 = vector.broadcast %cst_19 : f32 to vector<8x128xf32>
      %22 = arith.maximumf %20, %21 : vector<8x128xf32>
      %23 = tpu.iota {dimensions = array<i32: 1>} : vector<8x128xi32>
      %c32_i32 = arith.constant 32 : i32
      %24 = vector.broadcast %c32_i32 : i32 to vector<8x128xi32>
      %25 = arith.cmpi slt, %23, %24 : vector<8x128xi32>
      %cst_20 = arith.constant dense<0.000000e+00> : vector<8xf32>
      %26 = vector.multi_reduction <add>, %22, %cst_20 [1] : vector<8x128xf32> to vector<8xf32>
      %27 = vector.shape_cast %26 : vector<8xf32> to vector<8x1xf32>
      %cst_21 = arith.constant 3.125000e-02 : f32
      %28 = vector.broadcast %cst_21 : f32 to vector<8x1xf32>
      %29 = arith.mulf %27, %28 : vector<8x1xf32>
      %30 = vector.broadcast %29 : vector<8x1xf32> to vector<8x128xf32>
      %31 = arith.subf %22, %30 : vector<8x128xf32>
      %cst_22 = arith.constant 0.000000e+00 : f32
      %32 = vector.broadcast %cst_22 : f32 to vector<8x128xf32>
      %33 = arith.select %25, %31, %32 : vector<8x128xi1>, vector<8x128xf32>
      %34 = arith.mulf %33, %33 : vector<8x128xf32>
      %cst_23 = arith.constant dense<0.000000e+00> : vector<8xf32>
      %35 = vector.multi_reduction <add>, %34, %cst_23 [1] : vector<8x128xf32> to vector<8xf32>
      %36 = vector.shape_cast %35 : vector<8xf32> to vector<8x1xf32>
      %cst_24 = arith.constant 3.125000e-02 : f32
      %37 = vector.broadcast %cst_24 : f32 to vector<8x1xf32>
      %38 = arith.mulf %36, %37 : vector<8x1xf32>
      %cst_25 = arith.constant 9.99999974E-6 : f32
      %39 = vector.broadcast %cst_25 : f32 to vector<8x1xf32>
      %40 = arith.addf %38, %39 : vector<8x1xf32>
      %41 = math.rsqrt %40 : vector<8x1xf32>
      %42 = vector.broadcast %41 : vector<8x1xf32> to vector<8x128xf32>
      %43 = arith.mulf %33, %42 : vector<8x128xf32>
      %c0_26 = arith.constant 0 : index
      %c0_27 = arith.constant 0 : index
      %44 = vector.load %arg6[%c0_26, %c0_27] : memref<1x128xf32, #tpu.memory_space<vmem>>, vector<1x128xf32>
      %45 = vector.broadcast %44 : vector<1x128xf32> to vector<8x128xf32>
      %46 = arith.mulf %43, %45 : vector<8x128xf32>
      %c0_28 = arith.constant 0 : index
      %c0_29 = arith.constant 0 : index
      %47 = vector.load %arg7[%c0_28, %c0_29] : memref<1x128xf32, #tpu.memory_space<vmem>>, vector<1x128xf32>
      %48 = vector.broadcast %47 : vector<1x128xf32> to vector<8x128xf32>
      %49 = arith.addf %46, %48 : vector<8x128xf32>
      %c0_30 = arith.constant 0 : index
      %c0_31 = arith.constant 0 : index
      %c0_32 = arith.constant 0 : index
      %50 = vector.load %arg8[%c0_30, %c0_31, %c0_32] : memref<1x8x128xf32, #tpu.memory_space<vmem>>, vector<1x8x128xf32>
      %51 = vector.shape_cast %50 : vector<1x8x128xf32> to vector<8x128xf32>
      %52 = vector.shape_cast %49 : vector<8x128xf32> to vector<1x8x128xf32>
      tpu.vector_store %arg8[%c0_30, %c0_31, %c0_32], %52 {strides = array<i32>} : memref<1x8x128xf32, #tpu.memory_space<vmem>>, vector<1x8x128xf32>,
    } else {
    }
    return
  }
  func.func @transform_0(%arg0: i32, %arg1: i32) -> (i32, i32, i32) {
    %c0_i32 = arith.constant 0 : i32
    %c0_i32_0 = arith.constant 0 : i32
    return %arg0, %c0_i32, %arg1 : i32, i32, i32
  }
  func.func @transform_1(%arg0: i32, %arg1: i32) -> (i32, i32, i32) {
    %c0_i32 = arith.constant 0 : i32
    %c0_i32_0 = arith.constant 0 : i32
    return %arg0, %arg1, %c0_i32 : i32, i32, i32
  }
  func.func @transform_2(%arg0: i32, %arg1: i32) -> (i32, i32) {
    %c0_i32 = arith.constant 0 : i32
    %c0_i32_0 = arith.constant 0 : i32
    %c0_i32_1 = arith.constant 0 : i32
    return %c0_i32, %c0_i32_0 : i32, i32
  }
  func.func @transform_3(%arg0: i32, %arg1: i32) -> (i32, i32) {
    %c0_i32 = arith.constant 0 : i32
    %c0_i32_0 = arith.constant 0 : i32
    %c0_i32_1 = arith.constant 0 : i32
    return %c0_i32, %c0_i32_0 : i32, i32
  }
  func.func @transform_4(%arg0: i32, %arg1: i32) -> (i32, i32) {
    %c0_i32 = arith.constant 0 : i32
    %c0_i32_0 = arith.constant 0 : i32
    %c0_i32_1 = arith.constant 0 : i32
    return %c0_i32, %c0_i32_0 : i32, i32
  }
  func.func @transform_5(%arg0: i32, %arg1: i32) -> (i32, i32) {
    %c0_i32 = arith.constant 0 : i32
    %c0_i32_0 = arith.constant 0 : i32
    %c0_i32_1 = arith.constant 0 : i32
    return %c0_i32, %c0_i32_0 : i32, i32
  }
  func.func @transform_6(%arg0: i32, %arg1: i32) -> (i32, i32, i32) {
    %c0_i32 = arith.constant 0 : i32
    %c0_i32_0 = arith.constant 0 : i32
    %c0_i32_1 = arith.constant 0 : i32
    return %arg0, %c0_i32, %c0_i32_0 : i32, i32, i32
  }
}

</mosaic_0001>

<bundles_post_ra>
// kernel: tpu_custom_call.1
= control target key start
LH: loop header
LB: loop body
LE: loop exit
PB: predicated region body
PF: predicated region fallthrough
CT: control target
= control target key end

     0   :  { %s1383_s0 = inlined_call_operand.hbm [shape: bf16[2,8,16], index: 0, kind: input, shape index: {}]   ;;  %s1384_s1 = inlined_call_operand.hbm [shape: f32[2,16,128], index: 1, kind: input, shape index: {}]   ;;  %s1385_s2 = inlined_call_operand.hbm [shape: f32[128,128], index: 2, kind: input, shape index: {}]   ;;  %s1386_s3 = inlined_call_operand.vmem [shape: f32[1,128], index: 3, kind: input, shape index: {}]   ;;  %s1387_s4 = inlined_call_operand.vmem [shape: f32[1,128], index: 4, kind: input, shape index: {}]   ;;  %s1388_s5 = inlined_call_operand.vmem [shape: f32[1,128], index: 5, kind: input, shape index: {}]   ;;  %s1389_s6 = inlined_call_operand.hbm [shape: f32[2,8,128], index: 6, kind: output, shape index: {}]  }
   0x1   :  { %1396 = sst [smem:[#allocation16_spill]] %s1383_s0 }
   0x2   :  { %1397 = sst [smem:[#allocation17_spill]] %s1385_s2 }
   0x3   :  { %11 = vsyncpa [#allocation4], 0 }
   0x4   :  { %13 = vsyncpa [#allocation4 + $0x1], 0 }
   0x5   :  { %14 = vsyncpa [#allocation7], 0 }
   0x6   :  { %16 = vsyncpa [#allocation7 + $0x1], 0 }
   0x7   :  { %17 = vsyncpa [#allocation5], 0 }
   0x8   :  { %19 = vsyncpa [#allocation5 + $0x1], 0  ;;  %s1107_s21 = smov 0   ;;  %s1109_s22 = smov 0  }
   0x9   :  { %s1111_s23 = smov 0   ;;  %s1113_s24 = smov 0  }
   0xa   :  { %s1115_s25 = smov 0   ;;  %s1117_s26 = smov 0  }
   0xb LB: > { %s1138_s27 = sadd.s32 4294967295, %s1061_s26   ;;  %s686_s28 = sadd.s32 4294967294, %s1061_s26   ;;  %s1061_s26 = sphi %s1117_s26, %s25_s26   ;;  %s1057_s25 = sphi %s1115_s25, %s1425_s25   ;;  %s1053_s24 = sphi %s1113_s24, %s1424_s24   ;;  %s1049_s23 = sphi %s1111_s23, %s1423_s23   ;;  %s1045_s22 = sphi %s1109_s22, %s1422_s22   ;;  %s1041_s21 = sphi %s1107_s21, %s1421_s21  }
   0xc   : > { %p59_p0 = scmp.ne.s32.totalorder %s1045_s22, %s1041_s21  ;;  %p1390_p1 = scmp.eq.s32.totalorder %s1138_s27, 0 }
   0xd   : > { %p201_p3 = scmp.eq.s32.totalorder %s686_s28, 1  ;;  %p687_p5 = scmp.ge.s32.totalorder %s1061_s26, 1 }
   0xe   : > { %p1147_p4 = por %p1390_p1, %p59_p0  ;;  %p208_p7 = scmp.lt.s32.totalorder %s1061_s26, 3 }
   0xf   : > { %p1152_p6 = por %p201_p3, %p59_p0  ;;  %s1063_s8 = smov [#allocation8]  }
  0x10   : > { %s1398_s29 = scalar_select %p1147_p4, 1, 0 }
  0x11   : > { %s1399_s30 = scalar_select %p1152_p6, 1, 0 }
  0x12   : > { %p1157_p8 = pnand %p687_p5, %p208_p7  ;;  %s220_s9 = sshll.u32 %s1063_s8, 4  ;;  %s221_s9 = int_to_ptr.vmem [resolvable:$true] %s220_s9 }
  0x13   : > { %s37_s11 = sadd.s32 1, %s1057_s25  ;;  %s1402_s2 = sld [smem:[#allocation17_spill]] }
  0x14   : > { %s1400_s7 = scalar_select %p1157_p8, 1, 0 }
  0x15   : > { %p808_p9 = pneg %p1157_p8 }
  0x17   : > { %p1166_p11 = pnand %p808_p9, %p1390_p1 }
  0x19   : > { %s883_s14 = scalar_lea.hbm %s1402_s2, 2048  ;;  %p885_p13 = pneg %p1166_p11 }
  0x1a   : > { %p884_p12 = scmp.ne.s32.totalorder %s1402_s2, %s883_s14  ;;  %p890_p5 = scmp.lt.u32.totalorder %s883_s14, %s1402_s2 }
  0x1c   : > { %p886_p0 = pnand %p885_p13, %p884_p12 }
  0x1e   : > { %p887_p3 = pneg %p886_p0 }
  0x20   : > { %p892_p7 = pnand %p890_p5, %p887_p3 }
  0x22   : > { %895 = shalt.err (!%p892_p7)
}
  0x23   : > { %s896_s19 = scalar_lea.vmem %s221_s9, 2048  ;;  %p904_p2 = scmp.lt.s32.totalorder %s221_s9, %s221_s9 }
  0x24   : > { %p897_p9 = scmp.ne.s32.totalorder %s221_s9, %s896_s19  ;;  %p905_p6 = scmp.lt.s32.totalorder %s896_s19, %s896_s19 }
  0x26   : > { %p899_p10 = pnand %p897_p9, %p885_p13  ;;  %p906_p4 = por %p905_p6, %p904_p2 }
  0x28   : > { %p900_p1 = pneg %p899_p10 }
  0x2a   : > { %p907_p8 = pnand %p906_p4, %p900_p1 }
  0x2c   : > { %910 = shalt.err (!%p907_p8)
}
  0x2d   : > { %s1393_s20 = smov 128   ;;  %s1394_s28 = smov 8  }
  0x2e   : > { %811 = dma.hbm_to_vmem [thread:$0]  (!%p1166_p11), %s1402_s2, 2048, %s221_s9, [#allocation7], %s1393_s20, %s1393_s20, %s1394_s28  }
  0x2f   : > { %p39_p1 = scmp.ge.s32.totalorder %s37_s11, 2  ;;  %s46_s13 = sadd.s32 1, %s1049_s23 }
  0x30   : > { %p53_p2 = scmp.ne.s32.totalorder %s1049_s23, %s1045_s22  ;;  %p54_p4 = scmp.eq.s32.totalorder %s1061_s26, 0 }
  0x31   : > { %s1427_s11 = smov (%p39_p1, %s37_s11), 0  ;;  %p1405_p8 = scmp.eq.s32.totalorder %s1138_s27, 1 }
  0x32   : > { %1403 = sst [smem:[#allocation14_spill]] %s1427_s11  ;;  %p1196_p6 = por %p54_p4, %p53_p2 }
  0x33   : > { %p1202_p10 = por %p1405_p8, %p53_p2  ;;  %s41_s15 = ssub.s32 %s1057_s25, %s1427_s11 }
  0x34   : > { %p824_p11 = scmp.lt.s32.totalorder %s1061_s26, 2  ;;  %p44_p12 = scmp.eq.s32.totalorder %s41_s15, 0 }
  0x35   : > { %s1210_s9 = sand.u32 1, %s1049_s23   ;;  %s691_s18 = sshll.u32 %s1057_s25, 6 }
  0x36   : > { %s690_s16 = sshll.u32 %s1210_s9, 2  ;;  %s1408_s0 = sld [smem:[#allocation16_spill]] }
  0x37   : > { %s1214_s17 = scalar_select %p44_p12, %s1049_s23, %s46_s13  }
  0x38   : > { %s247_s20 = scalar_lea.vmem [#allocation3], %s690_s16  ;;  %p1226_p13 = pnand %p824_p11, %p1196_p6 }
  0x39   : > { %1407 = sst [smem:[#allocation15_spill]] %s1214_s17  ;;  %s255_s15 = sshll.u32 %s247_s20, 4  ;;  %s1222_s15 = int_to_ptr.vmem [resolvable:$true] %s255_s15 }
  0x3a   : > { %s692_s13 = sshll.u32 %s1210_s9, 4  ;;  %s244_s19 = scalar_lea.sflag [#allocation4], %s1210_s9 }
  0x3b   : > { %p913_p3 = pneg %p1226_p13 }
  0x3c   : > { %s1220_s12 = scalar_lea.hbm %s1408_s0, %s691_s18  ;;  %s916_s14 = scalar_lea.hbm %s1408_s0, 128 }
  0x3d   : > { %s911_s18 = scalar_lea.hbm %s1220_s12, 64  ;;  %p917_p9 = scmp.lt.u32.totalorder %s1220_s12, %s1408_s0 }
  0x3e   : > { %p912_p0 = scmp.ne.s32.totalorder %s1220_s12, %s911_s18  ;;  %p918_p1 = scmp.lt.u32.totalorder %s916_s14, %s911_s18 }
  0x3f   : > { %p920_p4 = scmp.lt.u32.totalorder %s911_s18, %s1220_s12 }
  0x40   : > { %p914_p5 = pnand %p913_p3, %p912_p0  ;;  %p919_p2 = por %p918_p1, %p917_p9 }
  0x42   : > { %p915_p7 = pneg %p914_p5  ;;  %p921_p6 = por %p920_p4, %p919_p2 }
  0x44   : > { %p922_p8 = pnand %p921_p6, %p915_p7 }
  0x46   : > { %925 = shalt.err (!%p922_p8)
}
  0x47   : > { %s926_s2 = scalar_lea.vmem %s1222_s15, 64  ;;  %s1066_s20 = smov [#allocation3]  }
  0x48   : > { %p927_p11 = scmp.ne.s32.totalorder %s1222_s15, %s926_s2  ;;  %s931_s16 = sshll.u32 %s1066_s20, 4  ;;  %s932_s16 = int_to_ptr.vmem [resolvable:$false] %s931_s16 }
  0x49   : > { %s933_s11 = scalar_lea.vmem %s932_s16, 128  ;;  %p934_p5 = scmp.lt.s32.totalorder %s1222_s15, %s932_s16 }
  0x4a   : > { %p929_p12 = pnand %p927_p11, %p913_p3  ;;  %p935_p9 = scmp.lt.s32.totalorder %s933_s11, %s926_s2 }
  0x4c   : > { %p930_p0 = pneg %p929_p12  ;;  %p936_p1 = por %p935_p9, %p934_p5 }
  0x4e   : > { %p937_p2 = pnand %p936_p1, %p930_p0 }
  0x50   : > { %940 = shalt.err (!%p937_p2)
}
  0x51   : > { %815 = dma.hbm_to_vmem [thread:$0]  (!%p1226_p13), %s1220_s12, 64, %s1222_s15, %s244_s19  }
  0x52   : > { %s266_s18 = scalar_lea.vmem [#allocation6], %s692_s13  ;;  %s262_s8 = sand.u32 1, %s1061_s26  }
  0x53   : > { %s275_s14 = sshll.u32 %s266_s18, 4  ;;  %s1410_s20 = sshll.u32 %s1057_s25, 8  ;;  %s1261_s14 = int_to_ptr.vmem [resolvable:$true] %s275_s14 }
  0x54   : > { %s1268_s11 = scalar_lea.hbm %s1384_s1, %s1410_s20  ;;  %s1270_s0 = scalar_lea.sflag [#allocation7], %s262_s8 }
  0x55   : > { %s941_s17 = scalar_lea.hbm %s1268_s11, 256  ;;  %s946_s15 = scalar_lea.hbm %s1384_s1, 512 }
  0x56   : > { %p942_p7 = scmp.ne.s32.totalorder %s1268_s11, %s941_s17  ;;  %p947_p8 = scmp.lt.u32.totalorder %s1268_s11, %s1384_s1 }
  0x57   : > { %p948_p11 = scmp.lt.u32.totalorder %s946_s15, %s941_s17  ;;  %p950_p0 = scmp.lt.u32.totalorder %s941_s17, %s1268_s11 }
  0x58   : > { %p944_p4 = pnand %p942_p7, %p913_p3 }
  0x59   : > { %p949_p12 = por %p948_p11, %p947_p8 }
  0x5a   : > { %p945_p6 = pneg %p944_p4 }
  0x5b   : > { %p951_p5 = por %p950_p0, %p949_p12 }
  0x5d   : > { %p952_p9 = pnand %p951_p5, %p945_p6 }
  0x5f   : > { %955 = shalt.err (!%p952_p9)
}
  0x60   : > { %s956_s18 = scalar_lea.vmem %s1261_s14, 256  ;;  %s1067_s8 = smov [#allocation6]  }
  0x61   : > { %p957_p1 = scmp.ne.s32.totalorder %s1261_s14, %s956_s18  ;;  %s961_s20 = sshll.u32 %s1067_s8, 4  ;;  %s962_s20 = int_to_ptr.vmem [resolvable:$false] %s961_s20 }
  0x62   : > { %s963_s2 = scalar_lea.vmem %s962_s20, 512  ;;  %p964_p4 = scmp.lt.s32.totalorder %s1261_s14, %s962_s20 }
  0x63   : > { %p959_p2 = pnand %p957_p1, %p913_p3  ;;  %p965_p8 = scmp.lt.s32.totalorder %s963_s2, %s956_s18 }
  0x65   : > { %p960_p7 = pneg %p959_p2  ;;  %p966_p11 = por %p965_p8, %p964_p4 }
  0x67   : > { %p967_p12 = pnand %p966_p11, %p960_p7 }
  0x69   : > { %970 = shalt.err (!%p967_p12)
}
  0x6a   : > { %s1411_s17 = smov 8   ;;  %s1412_s16 = smov 128  }
  0x6b   : > { %818 = dma.hbm_to_vmem [thread:$0]  (!%p1226_p13), %s1268_s11, 256, %s1261_s14, %s1270_s0, %s1412_s16, %s1412_s16, %s1411_s17  }
  0x6c   : > { %p1413_p3 = scmp.ne.s32.totalorder %s1400_s7, 0 }
  0x6d   : > { %s1302_s9 = sand.u32 (!%p1413_p3), 1, %s1045_s22   ;;  %p1414_p6 = scmp.ne.s32.totalorder (!%p1413_p3), %s1398_s29, 0 }
  0x6e   : > { %287 = sbr.rel (%p1413_p3) target bundleno = 884 (0x374), region = 44  ;;  %s696_s12 = sshll.u32 (!%p1413_p3), %s1302_s9, 2 }
  0x6f   : > { %s290_s15 = scalar_lea.sflag (!%p1413_p3), [#allocation4], %s1302_s9  ;;  %s293_s13 = scalar_lea.vmem (!%p1413_p3), [#allocation3], %s696_s12 }
  0x75   : > { %1024 = dma.done.wait (%p1414_p6), %s290_s15, 64  }
  0x76   : > { %1026 = vsyncadd (%p1414_p6), %s290_s15, 4294967232  ;;  %s298_s0 = sand.u32 1, %s1138_s27   ;;  %s697_s7 = sshll.u32 %s1302_s9, 4 }
  0x77   : > { %s299_s28 = scalar_lea.sflag [#allocation7], %s298_s0  ;;  %s302_s14 = scalar_lea.vmem [#allocation6], %s697_s7 }
  0x78   : > { %1028 = dma.done.wait (%p1414_p6), %s299_s28, 256  }
  0x79   : > { %1030 = vsyncadd (%p1414_p6), %s299_s28, 4294967040  ;;  %p1415_p13 = scmp.eq.s32.totalorder %s1138_s27, 0 }
  0x7b   : > { %1032 = dma.done.wait (%p1415_p13), [#allocation7], 2048   ;;  %p1416_p0 = pmov %p1415_p13 }
  0x7c   : > { %v1068_v0 = vmov 0.0|0.0   ;;  %vm1069_vm0 = vmmov 0   ;;  %v1070_v1 = vmov 0.0   ;;  %v349_v2 = vld [vmem:[%s302_s14] sm:$0xff]  ;;  %v350_v3 = vld [vmem:[%s302_s14 + $0x8] sm:$0xff]  ;;  %vm351_vm1 = vcmask 130048  }
  0x7d   : > { %1034 = vsyncadd (%p1416_p0), [#allocation7], 4294965248  ;;  %771 = vmatprep.subr.bf16.mxu0 %v1068_v0  ;;  %733 = vmatprep.mubr.msk.f32.mxu0 %vm1069_vm0, %v1070_v1  ;;  %v347_v4 = vld [vmem:[%s293_s13] sm:$0xf]  ;;  %v772_v5 = vpack.c.bf16 %v350_v3, %v349_v2  ;;  %v431_v6 = vld [vmem:[#allocation8] sm:$0xff]  ;;  %v525_v38 = vlaneseq  ;;  %s699_s11 = sshll.u32 %s1302_s9, 3 }
  0x7e   : > { %774 = vmatprep.subr.bf16.mxu1 %v1068_v0  ;;  %768 = vmatprep.mubr.msk.f32.mxu1 %vm1069_vm0, %v1070_v1  ;;  %v432_v7 = vld [vmem:[#allocation8 + $0x8] sm:$0xff]  ;;  %v433_v8 = vld [vmem:[#allocation8 + $0x10] sm:$0xff]  ;;  %v348_v9 = vunpack.c.l.bf16 %v347_v4  ;;  %v434_v11 = vld [vmem:[#allocation8 + $0x18] sm:$0xff]  ;;  %s705_s2 = sshll.u32 %s1053_s24, 7  ;;  %s339_s17 = scalar_lea.vmem [#allocation9], %s699_s11 }
  0x7f   : > { %v775_v10 = vpack.c.bf16 %v432_v7, %v431_v6  ;;  %773 = vmatpush3.bf16.msra.mxu0 %v772_v5  ;;  %v778_v12 = vpack.c.bf16 %v434_v11, %v433_v8  ;;  %v435_v13 = vld [vmem:[#allocation8 + $0x20] sm:$0xff]  ;;  %v436_v14 = vld [vmem:[#allocation8 + $0x28] sm:$0xff]  ;;  %v437_v16 = vld [vmem:[#allocation8 + $0x30] sm:$0xff]  ;;  %v526_v39 = vand.u32 127, %v525_v38  ;;  %s571_s16 = sshll.u32 %s339_s17, 4  ;;  %s1334_s13 = scalar_lea.hbm %s1389_s6, %s705_s2  ;;  %s1336_s16 = int_to_ptr.vmem [resolvable:$true] %s571_s16 }
  0x80   : > { %v781_v15 = vpack.c.bf16 %v436_v14, %v435_v13  ;;  %v438_v17 = vld [vmem:[#allocation8 + $0x38] sm:$0xff]  ;;  %v439_v19 = vld [vmem:[#allocation8 + $0x40] sm:$0xff]  ;;  %v440_v20 = vld [vmem:[#allocation8 + $0x48] sm:$0xff]  ;;  %s558_s0 = scalar_lea.sflag [#allocation5], %s1302_s9  ;;  %s971_s7 = scalar_lea.vmem %s1336_s16, 128 }
  0x81   : > { %776 = vmatpush3.bf16.msra.mxu1 %v775_v10  ;;  %v784_v18 = vpack.c.bf16 %v438_v17, %v437_v16  ;;  %v787_v21 = vpack.c.bf16 %v440_v20, %v439_v19  ;;  %v441_v22 = vld [vmem:[#allocation8 + $0x50] sm:$0xff]  ;;  %v442_v23 = vld [vmem:[#allocation8 + $0x58] sm:$0xff]  ;;  %v443_v25 = vld [vmem:[#allocation8 + $0x60] sm:$0xff]  ;;  %vm527_vm2 = vcmp.lt.s32.totalorder %v526_v39, 32  ;;  %p972_p5 = scmp.ne.s32.totalorder %s1336_s16, %s971_s7  ;;  %s1071_s24 = smov [#allocation9]  }
  0x82   : > { %777 = vmatprep.subr.bf16.mxu1 %v1068_v0  ;;  %734 = vmatmul.mubr.msk.f32.vlgmr.msra.gmra.mrb[0].mxu0 %vm351_vm1, %v348_v9  ;;  %v790_v24 = vpack.c.bf16 %v442_v23, %v441_v22  ;;  %v444_v26 = vld [vmem:[#allocation8 + $0x68] sm:$0xff]  ;;  %v445_v28 = vld [vmem:[#allocation8 + $0x70] sm:$0xff]  ;;  %v446_v29 = vld [vmem:[#allocation8 + $0x78] sm:$0xff]  ;;  %s975_s28 = sshll.u32 %s1071_s24, 4  ;;  %s976_s28 = int_to_ptr.vmem [resolvable:$false] %s975_s28 }
  0x83   : > { %v793_v27 = vpack.c.bf16 %v444_v26, %v443_v25  ;;  %v796_v30 = vpack.c.bf16 %v446_v29, %v445_v28  ;;  %v701_v33 = vld [vmem:[%s1386_s3] ss:$0 sm:$0xff]  ;;  %p973_p9 = pnand %p972_p5, %p1202_p10  ;;  %s977_s14 = scalar_lea.vmem %s976_s28, 256 }
  0x84   : > { %v702_v49 = vld [vmem:[%s1387_s4] ss:$0 sm:$0xff]  ;;  %p978_p2 = scmp.lt.s32.totalorder %s1336_s16, %s976_s28  ;;  %p979_p7 = scmp.lt.s32.totalorder %s977_s14, %s971_s7 }
  0x85   : > { %779 = vmatpush3.bf16.msra.mxu1 %v778_v12  ;;  %v703_v51 = vld [vmem:[%s1388_s5] ss:$0 sm:$0xff]  ;;  %p974_p1 = pneg %p973_p9 }
  0x86   : > { %780 = vmatprep.subr.bf16.mxu1 %v1068_v0  ;;  %p980_p4 = por %p979_p7, %p978_p2 }
  0x88   : > { %p981_p8 = pnand %p980_p4, %p974_p1 }
  0x89   : > { %782 = vmatpush3.bf16.msra.mxu1 %v781_v15 }
  0x8a   : > { %783 = vmatprep.subr.bf16.mxu1 %v1068_v0 }
  0x8d   : > { %785 = vmatpush3.bf16.msra.mxu1 %v784_v18 }
  0x8e   : > { %786 = vmatprep.subr.bf16.mxu1 %v1068_v0 }
  0x91   : > { %788 = vmatpush3.bf16.msra.mxu1 %v787_v21 }
  0x92   : > { %789 = vmatprep.subr.bf16.mxu1 %v1068_v0 }
  0x95   : > { %791 = vmatpush3.bf16.msra.mxu1 %v790_v24 }
  0x96   : > { %792 = vmatprep.subr.bf16.mxu1 %v1068_v0 }
  0x99   : > { %794 = vmatpush3.bf16.msra.mxu1 %v793_v27 }
  0x9a   : > { %795 = vmatprep.subr.bf16.mxu1 %v1068_v0 }
  0x9d   : > { %797 = vmatpush3.bf16.msra.mxu1 %v796_v30 }
 0x155   : > { %v421_v31 = vpop.f32.mrb[0].mxu0 }
 0x156   : > { %v735_v32 = vpop.f32.mrb[1].mxu0  ;;  %769 = vmatmul.mubr.f32.vlgmr.msra.gmra.mrb[0].mxu1 %v421_v31 }
 0x229   : > { %v520_v34 = vpop.f32.mrb[0].mxu1 }
 0x22a   : > { %v521_v35 = vadd.f32 %v701_v33, %v520_v34  ;;  %v770_v36 = vpop.f32.mrb[1].mxu1 }
 0x22c   : > { %v524_v37 = vmax.f32 %v521_v35, 0.0 }
 0x22e   : > { %528 = vadd.xlane.f32.xlu0 %v524_v37 }
 0x2bb   : > { %v529_v40 = vpop.xlane.xlu0 %528 }
 0x2bc   : > { %v530_v41 = vmul.f32 0.03125, %v529_v40 }
 0x2be   : > { %v531_v42 = vsub.f32 %v524_v37, %v530_v41 }
 0x2c0   : > { %v532_v43 = vsel %vm527_vm2, %v531_v42, 0.0 }
 0x2c1   : > { %v533_v44 = vmul.f32 %v532_v43, %v532_v43 }
 0x2c3   : > { %534 = vadd.xlane.f32.xlu0 %v533_v44 }
 0x350   : > { %v535_v45 = vpop.xlane.xlu0 %534 }
 0x351   : > { %v536_v46 = vmul.f32 0.03125, %v535_v45 }
 0x353   : > { %v537_v47 = vadd.f32 1e-05, %v536_v46 }
 0x355   : > { %881 = vrsqrt.f32 %v537_v47 }
 0x35f   : > { %v882_v48 = vpop.eup %881 }
 0x360   : > { %v539_v50 = vmul.f32 %v882_v48, %v532_v43 }
 0x362   : > { %v547_v52 = vmul.f32 %v702_v49, %v539_v50 }
 0x364   : > { %v555_v53 = vadd.f32 %v703_v51, %v547_v52 }
 0x366   : > { %556 = vst [vmem:[%s339_s17] sm:$0xff] %v555_v53 }
 0x367   : > { %984 = shalt.err (!%p981_p8)
}
 0x368   : > { %s985_s9 = scalar_lea.hbm %s1334_s13, 128  ;;  %s989_s11 = scalar_lea.hbm %s1389_s6, 256 }
 0x369   : > { %p986_p11 = scmp.ne.s32.totalorder %s1334_s13, %s985_s9  ;;  %p990_p6 = scmp.lt.u32.totalorder %s1334_s13, %s1389_s6 }
 0x36a   : > { %p991_p13 = scmp.lt.u32.totalorder %s989_s11, %s985_s9  ;;  %p993_p5 = scmp.lt.u32.totalorder %s985_s9, %s1334_s13 }
 0x36b   : > { %p987_p12 = pnand %p986_p11, %p1202_p10 }
 0x36c   : > { %p992_p0 = por %p991_p13, %p990_p6 }
 0x36d   : > { %p988_p3 = pneg %p987_p12 }
 0x36e   : > { %p994_p9 = por %p993_p5, %p992_p0 }
 0x370   : > { %p995_p1 = pnand %p994_p9, %p988_p3 }
 0x372   : > { %998 = shalt.err (!%p995_p1)
}
 0x373   : > { %806 = dma.vmem_to_hbm [thread:$0]  (%p1202_p10), %s1336_s16, 128, %s1334_s13, %s558_s0  }
 0x374 PF: > { %s583_s8 = sand.u32 1, %s1041_s21   ;;  %p1417_p2 = scmp.ne.s32.totalorder %s1399_s30, 0 }
 0x375   : > { %p1418_p7 = scmp.ge.s32.totalorder %s1061_s26, 2  ;;  %s584_s20 = scalar_lea.sflag [#allocation5], %s583_s8 }
 0x377   : > { %p820_p4 = pnand %p1418_p7, %p1417_p2 }
 0x379   : > { %1036 = dma.done.wait (!%p820_p4), %s584_s20, 128  }
 0x37a   : > { %1038 = vsyncadd (!%p820_p4), %s584_s20, 4294967168  ;;  %s25_s26 = sadd.s32 1, %s1061_s26   ;;  %s1419_s10 = sld [smem:[#allocation15_spill]] }
 0x37b   : > { %p22_p8 = scmp.ge.s32.totalorder %s25_s26, 4   ;;  %s1420_s2 = sld [smem:[#allocation14_spill]] }
 0x37c   : > { %s1421_s21 = smov %s1045_s22  ;;  %s1422_s22 = smov %s1049_s23 }
 0x37d   : > { %s1424_s24 = smov %s1057_s25  ;;  %24 = sbr.rel (!%p22_p8) target bundleno = 11 (0xb), region = 114 }
 0x380   : > { %s1423_s23 = smov %s1419_s10 }
 0x381   : > { %s1425_s25 = smov %s1420_s2 }
 0x384   :  { %589 = vsyncpa [#allocation4], 1 }
 0x385   :  { %591 = vsyncpa [#allocation4 + $0x1], 1 }
 0x386   :  { %592 = vsyncpa [#allocation7], 1 }
 0x387   :  { %594 = vsyncpa [#allocation7 + $0x1], 1 }
 0x388   :  { %595 = vsyncpa [#allocation5], 1 }
 0x389   :  { %597 = vsyncpa [#allocation5 + $0x1], 1 }

// kernel: tpu_custom_call.1
= control target key start
LH: loop header
LB: loop body
LE: loop exit
PB: predicated region body
PF: predicated region fallthrough
CT: control target
= control target key end

     0   :  { %s1383_s0 = inlined_call_operand.hbm [shape: bf16[2,8,16], index: 0, kind: input, shape index: {}]   ;;  %s1384_s1 = inlined_call_operand.hbm [shape: f32[2,16,128], index: 1, kind: input, shape index: {}]   ;;  %s1385_s2 = inlined_call_operand.hbm [shape: f32[128,128], index: 2, kind: input, shape index: {}]   ;;  %s1386_s3 = inlined_call_operand.vmem [shape: f32[1,128], index: 3, kind: input, shape index: {}]   ;;  %s1387_s4 = inlined_call_operand.vmem [shape: f32[1,128], index: 4, kind: input, shape index: {}]   ;;  %s1388_s5 = inlined_call_operand.vmem [shape: f32[1,128], index: 5, kind: input, shape index: {}]   ;;  %s1389_s6 = inlined_call_operand.hbm [shape: f32[2,8,128], index: 6, kind: output, shape index: {}]  }
   0x1   :  { %1396 = sst [smem:[#allocation16_spill]] %s1383_s0 }
   0x2   :  { %1397 = sst [smem:[#allocation17_spill]] %s1385_s2 }
   0x3   :  { %11 = vsyncpa [#allocation4], 0 }
   0x4   :  { %13 = vsyncpa [#allocation4 + $0x1], 0 }
   0x5   :  { %14 = vsyncpa [#allocation7], 0 }
   0x6   :  { %16 = vsyncpa [#allocation7 + $0x1], 0 }
   0x7   :  { %17 = vsyncpa [#allocation5], 0 }
   0x8   :  { %19 = vsyncpa [#allocation5 + $0x1], 0  ;;  %s1107_s21 = smov 0   ;;  %s1109_s22 = smov 0  }
   0x9   :  { %s1111_s23 = smov 0   ;;  %s1113_s24 = smov 0  }
   0xa   :  { %s1115_s25 = smov 0   ;;  %s1117_s26 = smov 0  }
   0xb LB: > { %s1138_s27 = sadd.s32 4294967295, %s1061_s26   ;;  %s686_s28 = sadd.s32 4294967294, %s1061_s26   ;;  %s1061_s26 = sphi %s1117_s26, %s25_s26   ;;  %s1057_s25 = sphi %s1115_s25, %s1425_s25   ;;  %s1053_s24 = sphi %s1113_s24, %s1424_s24   ;;  %s1049_s23 = sphi %s1111_s23, %s1423_s23   ;;  %s1045_s22 = sphi %s1109_s22, %s1422_s22   ;;  %s1041_s21 = sphi %s1107_s21, %s1421_s21  }
   0xc   : > { %p59_p0 = scmp.ne.s32.totalorder %s1045_s22, %s1041_s21  ;;  %p1390_p1 = scmp.eq.s32.totalorder %s1138_s27, 0 }
   0xd   : > { %p201_p3 = scmp.eq.s32.totalorder %s686_s28, 1  ;;  %p687_p5 = scmp.ge.s32.totalorder %s1061_s26, 1 }
   0xe   : > { %p1147_p4 = por %p1390_p1, %p59_p0  ;;  %p208_p7 = scmp.lt.s32.totalorder %s1061_s26, 3 }
   0xf   : > { %p1152_p6 = por %p201_p3, %p59_p0  ;;  %s1063_s8 = smov [#allocation8]  }
  0x10   : > { %s1398_s29 = scalar_select %p1147_p4, 1, 0 }
  0x11   : > { %s1399_s30 = scalar_select %p1152_p6, 1, 0 }
  0x12   : > { %p1157_p8 = pnand %p687_p5, %p208_p7  ;;  %s220_s9 = sshll.u32 %s1063_s8, 4  ;;  %s221_s9 = int_to_ptr.vmem [resolvable:$true] %s220_s9 }
  0x13   : > { %s37_s11 = sadd.s32 1, %s1057_s25  ;;  %s1402_s2 = sld [smem:[#allocation17_spill]] }
  0x14   : > { %s1400_s7 = scalar_select %p1157_p8, 1, 0 }
  0x15   : > { %p808_p9 = pneg %p1157_p8 }
  0x17   : > { %p1166_p11 = pnand %p808_p9, %p1390_p1 }
  0x19   : > { %s883_s14 = scalar_lea.hbm %s1402_s2, 2048  ;;  %p885_p13 = pneg %p1166_p11 }
  0x1a   : > { %p884_p12 = scmp.ne.s32.totalorder %s1402_s2, %s883_s14  ;;  %p890_p5 = scmp.lt.u32.totalorder %s883_s14, %s1402_s2 }
  0x1c   : > { %p886_p0 = pnand %p885_p13, %p884_p12 }
  0x1e   : > { %p887_p3 = pneg %p886_p0 }
  0x20   : > { %p892_p7 = pnand %p890_p5, %p887_p3 }
  0x22   : > { %895 = shalt.err (!%p892_p7)
}
  0x23   : > { %s896_s19 = scalar_lea.vmem %s221_s9, 2048  ;;  %p904_p2 = scmp.lt.s32.totalorder %s221_s9, %s221_s9 }
  0x24   : > { %p897_p9 = scmp.ne.s32.totalorder %s221_s9, %s896_s19  ;;  %p905_p6 = scmp.lt.s32.totalorder %s896_s19, %s896_s19 }
  0x26   : > { %p899_p10 = pnand %p897_p9, %p885_p13  ;;  %p906_p4 = por %p905_p6, %p904_p2 }
  0x28   : > { %p900_p1 = pneg %p899_p10 }
  0x2a   : > { %p907_p8 = pnand %p906_p4, %p900_p1 }
  0x2c   : > { %910 = shalt.err (!%p907_p8)
}
  0x2d   : > { %s1393_s20 = smov 128   ;;  %s1394_s28 = smov 8  }
  0x2e   : > { %811 = dma.hbm_to_vmem [thread:$0]  (!%p1166_p11), %s1402_s2, 2048, %s221_s9, [#allocation7], %s1393_s20, %s1393_s20, %s1394_s28  }
  0x2f   : > { %p39_p1 = scmp.ge.s32.totalorder %s37_s11, 2  ;;  %s46_s13 = sadd.s32 1, %s1049_s23 }
  0x30   : > { %p53_p2 = scmp.ne.s32.totalorder %s1049_s23, %s1045_s22  ;;  %p54_p4 = scmp.eq.s32.totalorder %s1061_s26, 0 }
  0x31   : > { %s1427_s11 = smov (%p39_p1, %s37_s11), 0  ;;  %p1405_p8 = scmp.eq.s32.totalorder %s1138_s27, 1 }
  0x32   : > { %1403 = sst [smem:[#allocation14_spill]] %s1427_s11  ;;  %p1196_p6 = por %p54_p4, %p53_p2 }
  0x33   : > { %p1202_p10 = por %p1405_p8, %p53_p2  ;;  %s41_s15 = ssub.s32 %s1057_s25, %s1427_s11 }
  0x34   : > { %p824_p11 = scmp.lt.s32.totalorder %s1061_s26, 2  ;;  %p44_p12 = scmp.eq.s32.totalorder %s41_s15, 0 }
  0x35   : > { %s1210_s9 = sand.u32 1, %s1049_s23   ;;  %s691_s18 = sshll.u32 %s1057_s25, 6 }
  0x36   : > { %s690_s16 = sshll.u32 %s1210_s9, 2  ;;  %s1408_s0 = sld [smem:[#allocation16_spill]] }
  0x37   : > { %s1214_s17 = scalar_select %p44_p12, %s1049_s23, %s46_s13  }
  0x38   : > { %s247_s20 = scalar_lea.vmem [#allocation3], %s690_s16  ;;  %p1226_p13 = pnand %p824_p11, %p1196_p6 }
  0x39   : > { %1407 = sst [smem:[#allocation15_spill]] %s1214_s17  ;;  %s255_s15 = sshll.u32 %s247_s20, 4  ;;  %s1222_s15 = int_to_ptr.vmem [resolvable:$true] %s255_s15 }
  0x3a   : > { %s692_s13 = sshll.u32 %s1210_s9, 4  ;;  %s244_s19 = scalar_lea.sflag [#allocation4], %s1210_s9 }
  0x3b   : > { %p913_p3 = pneg %p1226_p13 }
  0x3c   : > { %s1220_s12 = scalar_lea.hbm %s1408_s0, %s691_s18  ;;  %s916_s14 = scalar_lea.hbm %s1408_s0, 128 }
  0x3d   : > { %s911_s18 = scalar_lea.hbm %s1220_s12, 64  ;;  %p917_p9 = scmp.lt.u32.totalorder %s1220_s12, %s1408_s0 }
  0x3e   : > { %p912_p0 = scmp.ne.s32.totalorder %s1220_s12, %s911_s18  ;;  %p918_p1 = scmp.lt.u32.totalorder %s916_s14, %s911_s18 }
  0x3f   : > { %p920_p4 = scmp.lt.u32.totalorder %s911_s18, %s1220_s12 }
  0x40   : > { %p914_p5 = pnand %p913_p3, %p912_p0  ;;  %p919_p2 = por %p918_p1, %p917_p9 }
  0x42   : > { %p915_p7 = pneg %p914_p5  ;;  %p921_p6 = por %p920_p4, %p919_p2 }
  0x44   : > { %p922_p8 = pnand %p921_p6, %p915_p7 }
  0x46   : > { %925 = shalt.err (!%p922_p8)
}
  0x47   : > { %s926_s2 = scalar_lea.vmem %s1222_s15, 64  ;;  %s1066_s20 = smov [#allocation3]  }
  0x48   : > { %p927_p11 = scmp.ne.s32.totalorder %s1222_s15, %s926_s2  ;;  %s931_s16 = sshll.u32 %s1066_s20, 4  ;;  %s932_s16 = int_to_ptr.vmem [resolvable:$false] %s931_s16 }
  0x49   : > { %s933_s11 = scalar_lea.vmem %s932_s16, 128  ;;  %p934_p5 = scmp.lt.s32.totalorder %s1222_s15, %s932_s16 }
  0x4a   : > { %p929_p12 = pnand %p927_p11, %p913_p3  ;;  %p935_p9 = scmp.lt.s32.totalorder %s933_s11, %s926_s2 }
  0x4c   : > { %p930_p0 = pneg %p929_p12  ;;  %p936_p1 = por %p935_p9, %p934_p5 }
  0x4e   : > { %p937_p2 = pnand %p936_p1, %p930_p0 }
  0x50   : > { %940 = shalt.err (!%p937_p2)
}
  0x51   : > { %815 = dma.hbm_to_vmem [thread:$0]  (!%p1226_p13), %s1220_s12, 64, %s1222_s15, %s244_s19  }
  0x52   : > { %s266_s18 = scalar_lea.vmem [#allocation6], %s692_s13  ;;  %s262_s8 = sand.u32 1, %s1061_s26  }
  0x53   : > { %s275_s14 = sshll.u32 %s266_s18, 4  ;;  %s1410_s20 = sshll.u32 %s1057_s25, 8  ;;  %s1261_s14 = int_to_ptr.vmem [resolvable:$true] %s275_s14 }
  0x54   : > { %s1268_s11 = scalar_lea.hbm %s1384_s1, %s1410_s20  ;;  %s1270_s0 = scalar_lea.sflag [#allocation7], %s262_s8 }
  0x55   : > { %s941_s17 = scalar_lea.hbm %s1268_s11, 256  ;;  %s946_s15 = scalar_lea.hbm %s1384_s1, 512 }
  0x56   : > { %p942_p7 = scmp.ne.s32.totalorder %s1268_s11, %s941_s17  ;;  %p947_p8 = scmp.lt.u32.totalorder %s1268_s11, %s1384_s1 }
  0x57   : > { %p948_p11 = scmp.lt.u32.totalorder %s946_s15, %s941_s17  ;;  %p950_p0 = scmp.lt.u32.totalorder %s941_s17, %s1268_s11 }
  0x58   : > { %p944_p4 = pnand %p942_p7, %p913_p3 }
  0x59   : > { %p949_p12 = por %p948_p11, %p947_p8 }
  0x5a   : > { %p945_p6 = pneg %p944_p4 }
  0x5b   : > { %p951_p5 = por %p950_p0, %p949_p12 }
  0x5d   : > { %p952_p9 = pnand %p951_p5, %p945_p6 }
  0x5f   : > { %955 = shalt.err (!%p952_p9)
}
  0x60   : > { %s956_s18 = scalar_lea.vmem %s1261_s14, 256  ;;  %s1067_s8 = smov [#allocation6]  }
  0x61   : > { %p957_p1 = scmp.ne.s32.totalorder %s1261_s14, %s956_s18  ;;  %s961_s20 = sshll.u32 %s1067_s8, 4  ;;  %s962_s20 = int_to_ptr.vmem [resolvable:$false] %s961_s20 }
  0x62   : > { %s963_s2 = scalar_lea.vmem %s962_s20, 512  ;;  %p964_p4 = scmp.lt.s32.totalorder %s1261_s14, %s962_s20 }
  0x63   : > { %p959_p2 = pnand %p957_p1, %p913_p3  ;;  %p965_p8 = scmp.lt.s32.totalorder %s963_s2, %s956_s18 }
  0x65   : > { %p960_p7 = pneg %p959_p2  ;;  %p966_p11 = por %p965_p8, %p964_p4 }
  0x67   : > { %p967_p12 = pnand %p966_p11, %p960_p7 }
  0x69   : > { %970 = shalt.err (!%p967_p12)
}
  0x6a   : > { %s1411_s17 = smov 8   ;;  %s1412_s16 = smov 128  }
  0x6b   : > { %818 = dma.hbm_to_vmem [thread:$0]  (!%p1226_p13), %s1268_s11, 256, %s1261_s14, %s1270_s0, %s1412_s16, %s1412_s16, %s1411_s17  }
  0x6c   : > { %p1413_p3 = scmp.ne.s32.totalorder %s1400_s7, 0 }
  0x6d   : > { %s1302_s9 = sand.u32 (!%p1413_p3), 1, %s1045_s22   ;;  %p1414_p6 = scmp.ne.s32.totalorder (!%p1413_p3), %s1398_s29, 0 }
  0x6e   : > { %287 = sbr.rel (%p1413_p3) target bundleno = 884 (0x374), region = 44  ;;  %s696_s12 = sshll.u32 (!%p1413_p3), %s1302_s9, 2 }
  0x6f   : > { %s290_s15 = scalar_lea.sflag (!%p1413_p3), [#allocation4], %s1302_s9  ;;  %s293_s13 = scalar_lea.vmem (!%p1413_p3), [#allocation3], %s696_s12 }
  0x75   : > { %1024 = dma.done.wait (%p1414_p6), %s290_s15, 64  }
  0x76   : > { %1026 = vsyncadd (%p1414_p6), %s290_s15, 4294967232  ;;  %s298_s0 = sand.u32 1, %s1138_s27   ;;  %s697_s7 = sshll.u32 %s1302_s9, 4 }
  0x77   : > { %s299_s28 = scalar_lea.sflag [#allocation7], %s298_s0  ;;  %s302_s14 = scalar_lea.vmem [#allocation6], %s697_s7 }
  0x78   : > { %1028 = dma.done.wait (%p1414_p6), %s299_s28, 256  }
  0x79   : > { %1030 = vsyncadd (%p1414_p6), %s299_s28, 4294967040  ;;  %p1415_p13 = scmp.eq.s32.totalorder %s1138_s27, 0 }
  0x7b   : > { %1032 = dma.done.wait (%p1415_p13), [#allocation7], 2048   ;;  %p1416_p0 = pmov %p1415_p13 }
  0x7c   : > { %v1068_v0 = vmov 0.0|0.0   ;;  %vm1069_vm0 = vmmov 0   ;;  %v1070_v1 = vmov 0.0   ;;  %v349_v2 = vld [vmem:[%s302_s14] sm:$0xff]  ;;  %v350_v3 = vld [vmem:[%s302_s14 + $0x8] sm:$0xff]  ;;  %vm351_vm1 = vcmask 130048  }
  0x7d   : > { %1034 = vsyncadd (%p1416_p0), [#allocation7], 4294965248  ;;  %771 = vmatprep.subr.bf16.mxu0 %v1068_v0  ;;  %733 = vmatprep.mubr.msk.f32.mxu0 %vm1069_vm0, %v1070_v1  ;;  %v347_v4 = vld [vmem:[%s293_s13] sm:$0xf]  ;;  %v772_v5 = vpack.c.bf16 %v350_v3, %v349_v2  ;;  %v431_v6 = vld [vmem:[#allocation8] sm:$0xff]  ;;  %v525_v38 = vlaneseq  ;;  %s699_s11 = sshll.u32 %s1302_s9, 3 }
  0x7e   : > { %774 = vmatprep.subr.bf16.mxu1 %v1068_v0  ;;  %768 = vmatprep.mubr.msk.f32.mxu1 %vm1069_vm0, %v1070_v1  ;;  %v432_v7 = vld [vmem:[#allocation8 + $0x8] sm:$0xff]  ;;  %v433_v8 = vld [vmem:[#allocation8 + $0x10] sm:$0xff]  ;;  %v348_v9 = vunpack.c.l.bf16 %v347_v4  ;;  %v434_v11 = vld [vmem:[#allocation8 + $0x18] sm:$0xff]  ;;  %s705_s2 = sshll.u32 %s1053_s24, 7  ;;  %s339_s17 = scalar_lea.vmem [#allocation9], %s699_s11 }
  0x7f   : > { %v775_v10 = vpack.c.bf16 %v432_v7, %v431_v6  ;;  %773 = vmatpush3.bf16.msra.mxu0 %v772_v5  ;;  %v778_v12 = vpack.c.bf16 %v434_v11, %v433_v8  ;;  %v435_v13 = vld [vmem:[#allocation8 + $0x20] sm:$0xff]  ;;  %v436_v14 = vld [vmem:[#allocation8 + $0x28] sm:$0xff]  ;;  %v437_v16 = vld [vmem:[#allocation8 + $0x30] sm:$0xff]  ;;  %v526_v39 = vand.u32 127, %v525_v38  ;;  %s571_s16 = sshll.u32 %s339_s17, 4  ;;  %s1334_s13 = scalar_lea.hbm %s1389_s6, %s705_s2  ;;  %s1336_s16 = int_to_ptr.vmem [resolvable:$true] %s571_s16 }
  0x80   : > { %v781_v15 = vpack.c.bf16 %v436_v14, %v435_v13  ;;  %v438_v17 = vld [vmem:[#allocation8 + $0x38] sm:$0xff]  ;;  %v439_v19 = vld [vmem:[#allocation8 + $0x40] sm:$0xff]  ;;  %v440_v20 = vld [vmem:[#allocation8 + $0x48] sm:$0xff]  ;;  %s558_s0 = scalar_lea.sflag [#allocation5], %s1302_s9  ;;  %s971_s7 = scalar_lea.vmem %s1336_s16, 128 }
  0x81   : > { %776 = vmatpush3.bf16.msra.mxu1 %v775_v10  ;;  %v784_v18 = vpack.c.bf16 %v438_v17, %v437_v16  ;;  %v787_v21 = vpack.c.bf16 %v440_v20, %v439_v19  ;;  %v441_v22 = vld [vmem:[#allocation8 + $0x50] sm:$0xff]  ;;  %v442_v23 = vld [vmem:[#allocation8 + $0x58] sm:$0xff]  ;;  %v443_v25 = vld [vmem:[#allocation8 + $0x60] sm:$0xff]  ;;  %vm527_vm2 = vcmp.lt.s32.totalorder %v526_v39, 32  ;;  %p972_p5 = scmp.ne.s32.totalorder %s1336_s16, %s971_s7  ;;  %s1071_s24 = smov [#allocation9]  }
  0x82   : > { %777 = vmatprep.subr.bf16.mxu1 %v1068_v0  ;;  %734 = vmatmul.mubr.msk.f32.vlgmr.msra.gmra.mrb[0].mxu0 %vm351_vm1, %v348_v9  ;;  %v790_v24 = vpack.c.bf16 %v442_v23, %v441_v22  ;;  %v444_v26 = vld [vmem:[#allocation8 + $0x68] sm:$0xff]  ;;  %v445_v28 = vld [vmem:[#allocation8 + $0x70] sm:$0xff]  ;;  %v446_v29 = vld [vmem:[#allocation8 + $0x78] sm:$0xff]  ;;  %s975_s28 = sshll.u32 %s1071_s24, 4  ;;  %s976_s28 = int_to_ptr.vmem [resolvable:$false] %s975_s28 }
  0x83   : > { %v793_v27 = vpack.c.bf16 %v444_v26, %v443_v25  ;;  %v796_v30 = vpack.c.bf16 %v446_v29, %v445_v28  ;;  %v701_v33 = vld [vmem:[%s1386_s3] ss:$0 sm:$0xff]  ;;  %p973_p9 = pnand %p972_p5, %p1202_p10  ;;  %s977_s14 = scalar_lea.vmem %s976_s28, 256 }
  0x84   : > { %v702_v49 = vld [vmem:[%s1387_s4] ss:$0 sm:$0xff]  ;;  %p978_p2 = scmp.lt.s32.totalorder %s1336_s16, %s976_s28  ;;  %p979_p7 = scmp.lt.s32.totalorder %s977_s14, %s971_s7 }
  0x85   : > { %779 = vmatpush3.bf16.msra.mxu1 %v778_v12  ;;  %v703_v51 = vld [vmem:[%s1388_s5] ss:$0 sm:$0xff]  ;;  %p974_p1 = pneg %p973_p9 }
  0x86   : > { %780 = vmatprep.subr.bf16.mxu1 %v1068_v0  ;;  %p980_p4 = por %p979_p7, %p978_p2 }
  0x88   : > { %p981_p8 = pnand %p980_p4, %p974_p1 }
  0x89   : > { %782 = vmatpush3.bf16.msra.mxu1 %v781_v15 }
  0x8a   : > { %783 = vmatprep.subr.bf16.mxu1 %v1068_v0 }
  0x8d   : > { %785 = vmatpush3.bf16.msra.mxu1 %v784_v18 }
  0x8e   : > { %786 = vmatprep.subr.bf16.mxu1 %v1068_v0 }
  0x91   : > { %788 = vmatpush3.bf16.msra.mxu1 %v787_v21 }
  0x92   : > { %789 = vmatprep.subr.bf16.mxu1 %v1068_v0 }
  0x95   : > { %791 = vmatpush3.bf16.msra.mxu1 %v790_v24 }
  0x96   : > { %792 = vmatprep.subr.bf16.mxu1 %v1068_v0 }
  0x99   : > { %794 = vmatpush3.bf16.msra.mxu1 %v793_v27 }
  0x9a   : > { %795 = vmatprep.subr.bf16.mxu1 %v1068_v0 }
  0x9d   : > { %797 = vmatpush3.bf16.msra.mxu1 %v796_v30 }
 0x155   : > { %v421_v31 = vpop.f32.mrb[0].mxu0 }
 0x156   : > { %v735_v32 = vpop.f32.mrb[1].mxu0  ;;  %769 = vmatmul.mubr.f32.vlgmr.msra.gmra.mrb[0].mxu1 %v421_v31 }
 0x229   : > { %v520_v34 = vpop.f32.mrb[0].mxu1 }
 0x22a   : > { %v521_v35 = vadd.f32 %v701_v33, %v520_v34  ;;  %v770_v36 = vpop.f32.mrb[1].mxu1 }
 0x22c   : > { %v524_v37 = vmax.f32 %v521_v35, 0.0 }
 0x22e   : > { %528 = vadd.xlane.f32.xlu0 %v524_v37 }
 0x2bb   : > { %v529_v40 = vpop.xlane.xlu0 %528 }
 0x2bc   : > { %v530_v41 = vmul.f32 0.03125, %v529_v40 }
 0x2be   : > { %v531_v42 = vsub.f32 %v524_v37, %v530_v41 }
 0x2c0   : > { %v532_v43 = vsel %vm527_vm2, %v531_v42, 0.0 }
 0x2c1   : > { %v533_v44 = vmul.f32 %v532_v43, %v532_v43 }
 0x2c3   : > { %534 = vadd.xlane.f32.xlu0 %v533_v44 }
 0x350   : > { %v535_v45 = vpop.xlane.xlu0 %534 }
 0x351   : > { %v536_v46 = vmul.f32 0.03125, %v535_v45 }
 0x353   : > { %v537_v47 = vadd.f32 1e-05, %v536_v46 }
 0x355   : > { %881 = vrsqrt.f32 %v537_v47 }
 0x35f   : > { %v882_v48 = vpop.eup %881 }
 0x360   : > { %v539_v50 = vmul.f32 %v882_v48, %v532_v43 }
 0x362   : > { %v547_v52 = vmul.f32 %v702_v49, %v539_v50 }
 0x364   : > { %v555_v53 = vadd.f32 %v703_v51, %v547_v52 }
 0x366   : > { %556 = vst [vmem:[%s339_s17] sm:$0xff] %v555_v53 }
 0x367   : > { %984 = shalt.err (!%p981_p8)
}
 0x368   : > { %s985_s9 = scalar_lea.hbm %s1334_s13, 128  ;;  %s989_s11 = scalar_lea.hbm %s1389_s6, 256 }
 0x369   : > { %p986_p11 = scmp.ne.s32.totalorder %s1334_s13, %s985_s9  ;;  %p990_p6 = scmp.lt.u32.totalorder %s1334_s13, %s1389_s6 }
 0x36a   : > { %p991_p13 = scmp.lt.u32.totalorder %s989_s11, %s985_s9  ;;  %p993_p5 = scmp.lt.u32.totalorder %s985_s9, %s1334_s13 }
 0x36b   : > { %p987_p12 = pnand %p986_p11, %p1202_p10 }
 0x36c   : > { %p992_p0 = por %p991_p13, %p990_p6 }
 0x36d   : > { %p988_p3 = pneg %p987_p12 }
 0x36e   : > { %p994_p9 = por %p993_p5, %p992_p0 }
 0x370   : > { %p995_p1 = pnand %p994_p9, %p988_p3 }
 0x372   : > { %998 = shalt.err (!%p995_p1)
}
 0x373   : > { %806 = dma.vmem_to_hbm [thread:$0]  (%p1202_p10), %s1336_s16, 128, %s1334_s13, %s558_s0  }
 0x374 PF: > { %s583_s8 = sand.u32 1, %s1041_s21   ;;  %p1417_p2 = scmp.ne.s32.totalorder %s1399_s30, 0 }
 0x375   : > { %p1418_p7 = scmp.ge.s32.totalorder %s1061_s26, 2  ;;  %s584_s20 = scalar_lea.sflag [#allocation5], %s583_s8 }
 0x377   : > { %p820_p4 = pnand %p1418_p7, %p1417_p2 }
 0x379   : > { %1036 = dma.done.wait (!%p820_p4), %s584_s20, 128  }
 0x37a   : > { %1038 = vsyncadd (!%p820_p4), %s584_s20, 4294967168  ;;  %s25_s26 = sadd.s32 1, %s1061_s26   ;;  %s1419_s10 = sld [smem:[#allocation15_spill]] }
 0x37b   : > { %p22_p8 = scmp.ge.s32.totalorder %s25_s26, 4   ;;  %s1420_s2 = sld [smem:[#allocation14_spill]] }
 0x37c   : > { %s1421_s21 = smov %s1045_s22  ;;  %s1422_s22 = smov %s1049_s23 }
 0x37d   : > { %s1424_s24 = smov %s1057_s25  ;;  %24 = sbr.rel (!%p22_p8) target bundleno = 11 (0xb), region = 114 }
 0x380   : > { %s1423_s23 = smov %s1419_s10 }
 0x381   : > { %s1425_s25 = smov %s1420_s2 }
 0x384   :  { %589 = vsyncpa [#allocation4], 1 }
 0x385   :  { %591 = vsyncpa [#allocation4 + $0x1], 1 }
 0x386   :  { %592 = vsyncpa [#allocation7], 1 }
 0x387   :  { %594 = vsyncpa [#allocation7 + $0x1], 1 }
 0x388   :  { %595 = vsyncpa [#allocation5], 1 }
 0x389   :  { %597 = vsyncpa [#allocation5 + $0x1], 1 }

</bundles_post_ra>
